<compile_context>
chip_gen: v6e
topology: v6e:2x2x1
jax: 0.10.0
libtpu: 0.0.40
codegen_flags: <defaults>
</compile_context>

<pallas_src>
import jax
import jax.numpy as jnp
from jax.experimental import pallas as pl
from jax.experimental.pallas import tpu as pltpu


# ------------------------------ Pallas kernel --------------------------------
def _identity_kernel(x_ref, o_ref):
  o_ref[...] = x_ref[...]


def pallas_identity(x):
  """Identity forward pass (IDLayer): out == x, copied through a Pallas kernel."""
  orig_shape = x.shape
  n = x.size
  LANE = 128

  if n % LANE == 0:
    rows = n // LANE
    x2 = x.reshape(rows, LANE)
    # Largest tile (in rows) that evenly divides `rows`, capped at 1024 rows
    # (1024 x 128 x 4B = 512 KiB per buffer -> comfortably inside VMEM with
    # double buffering on v5e/v6e/v7x).
    tm = rows
    for cand in (1024, 512, 256, 128, 64, 32, 16, 8):
      if rows % cand == 0:
        tm = cand
        break
    grid = (rows // tm,)
    out = pl.pallas_call(
        _identity_kernel,
        out_shape=jax.ShapeDtypeStruct((rows, LANE), x.dtype),
        grid=grid,
        in_specs=[pl.BlockSpec((tm, LANE), lambda i: (i, 0))],
        out_specs=pl.BlockSpec((tm, LANE), lambda i: (i, 0)),
        compiler_params=pltpu.CompilerParams(
            dimension_semantics=("parallel",)),
    )(x2)
    return out.reshape(orig_shape)

  # Fallback for element counts not divisible by 128: one full-array block
  # (block_shape == array shape is always legal), no host-side padding copies.
  x2 = x.reshape(1, n)
  out = pl.pallas_call(
      _identity_kernel,
      out_shape=jax.ShapeDtypeStruct((1, n), x.dtype),
  )(x2)
  return out.reshape(orig_shape)


def id_layer_forward(x):
  """Forward pass of IDLayer."""
  return pallas_identity(x)


# ---------------------------------- main --------------------------------------
if __name__ == "__main__":
  key = jax.random.PRNGKey(0)
  # Small shapes consistent with the module (it accepts any tensor).
  x = jax.random.normal(key, (2, 4, 16, 16), dtype=jnp.float32)

  fwd = jax.jit(id_layer_forward)
  y = fwd(x)
  jax.block_until_ready(y)

  assert y.shape == x.shape and y.dtype == x.dtype
  assert bool(jnp.array_equal(y, x))
  print("KERNEL_OK")
</pallas_src>

<mosaic_0001>
module attributes {stable_mosaic.version = 11 : i64} {
  func.func @_identity_kernel(%arg0: i32, %arg1: memref<16x128xf32, #tpu.memory_space<vmem>>, %arg2: memref<16x128xf32, #tpu.memory_space<vmem>>) attributes {dimension_semantics = [#tpu.dimension_semantics<parallel>], iteration_bounds = array<i64: 1>, scalar_prefetch = 0 : i64, scratch_operands = 0 : i64, tpu.core_type = #tpu.core_type<tc>, window_params = [{transform_indices = @transform_0, window_bounds = array<i64: 16, 128>}, {transform_indices = @transform_1, window_bounds = array<i64: 16, 128>}]} {
    %c0 = arith.constant 0 : index
    %c0_0 = arith.constant 0 : index
    %0 = vector.load %arg1[%c0, %c0_0] : memref<16x128xf32, #tpu.memory_space<vmem>>, vector<16x128xf32>
    %c0_1 = arith.constant 0 : index
    %c0_2 = arith.constant 0 : index
    %1 = vector.load %arg2[%c0_1, %c0_2] : memref<16x128xf32, #tpu.memory_space<vmem>>, vector<16x128xf32>
    tpu.vector_store %arg2[%c0_1, %c0_2], %0 {strides = array<i32>} : memref<16x128xf32, #tpu.memory_space<vmem>>, vector<16x128xf32>,
    return
  }
  func.func @transform_0(%arg0: i32) -> (i32, i32) {
    %c0_i32 = arith.constant 0 : i32
    %c0_i32_0 = arith.constant 0 : i32
    return %arg0, %c0_i32 : i32, i32
  }
  func.func @transform_1(%arg0: i32) -> (i32, i32) {
    %c0_i32 = arith.constant 0 : i32
    %c0_i32_0 = arith.constant 0 : i32
    return %arg0, %c0_i32 : i32, i32
  }
}

</mosaic_0001>

<bundles_post_ra>
// kernel: id_layer_forward.1
= control target key start
LH: loop header
LB: loop body
LE: loop exit
PB: predicated region body
PF: predicated region fallthrough
CT: control target
= control target key end

     0   :  { %s38_s0 = inlined_call_operand.vmem [shape: f32[16,128], index: 0, kind: input, shape index: {}]   ;;  %s39_s1 = inlined_call_operand.vmem [shape: f32[16,128], index: 1, kind: output, shape index: {}]  }
   0x1   :  { %v8_v0 = vld [vmem:[%s38_s0] sm:$0xff]  ;;  %v9_v1 = vld [vmem:[%s38_s0 + $0x8] sm:$0xff] }
   0x2   :  { %10 = vst [vmem:[%s39_s1] sm:$0xff] %v8_v0  ;;  %11 = vst [vmem:[%s39_s1 + $0x8] sm:$0xff] %v9_v1 }

</bundles_post_ra>
